<compile_context>
chip_gen: v7x
topology: tpu7x:2x2x1
jax: 0.10.0
libtpu: 0.0.40
codegen_flags: <defaults>
</compile_context>

<pallas_src>
import jax
import jax.numpy as jnp
from jax.experimental import pallas as pl
from jax.experimental.pallas import tpu as pltpu


def _mlp_kernel(x_ref, w1_ref, b1_ref, w2_ref, b2_ref, o_ref):
    # One grid step == one sub-model.  Refs are the per-model slabs
    # (leading model dim squeezed by the BlockSpecs):
    #   x_ref : (B, Din)   w1_ref: (Din, H)   b1_ref: (1, H)
    #   w2_ref: (H, Dout)  b2_ref: (1, Dout)  o_ref : (B, Dout)
    h = jnp.dot(x_ref[...], w1_ref[...], preferred_element_type=jnp.float32)
    h = jnp.maximum(h + b1_ref[...], 0.0)                      # bias + ReLU (VPU)
    o = jnp.dot(h, w2_ref[...], preferred_element_type=jnp.float32)
    o_ref[...] = (o + b2_ref[...]).astype(o_ref.dtype)


@jax.jit
def unified_model_forward(x, w1, b1, w2, b2):
    """x: [M,B,Din]; w1: [M,Din,H]; b1: [M,1,H]; w2: [M,H,Dout]; b2: [M,1,Dout].
    Returns stacked outputs [M, B, Dout] with out[i] == models[i](x[i])."""
    M, B, Din = x.shape
    H = w1.shape[-1]
    Dout = w2.shape[-1]

    flops = 2 * M * B * (Din * H + H * Dout)
    bytes_accessed = 4 * (x.size + w1.size + b1.size + w2.size + b2.size
                          + M * B * Dout)

    return pl.pallas_call(
        _mlp_kernel,
        out_shape=jax.ShapeDtypeStruct((M, B, Dout), x.dtype),
        grid=(M,),
        in_specs=[
            pl.BlockSpec((None, B, Din), lambda m: (m, 0, 0)),
            pl.BlockSpec((None, Din, H), lambda m: (m, 0, 0)),
            pl.BlockSpec((None, 1, H), lambda m: (m, 0, 0)),
            pl.BlockSpec((None, H, Dout), lambda m: (m, 0, 0)),
            pl.BlockSpec((None, 1, Dout), lambda m: (m, 0, 0)),
        ],
        out_specs=pl.BlockSpec((None, B, Dout), lambda m: (m, 0, 0)),
        compiler_params=pltpu.CompilerParams(
            dimension_semantics=("parallel",),
        ),
        cost_estimate=pl.CostEstimate(
            flops=flops, transcendentals=0, bytes_accessed=bytes_accessed),
    )(x, w1, b1, w2, b2)


if __name__ == "__main__":
    # Small deterministic setup: 2 sub-models, batch=8, in=32, hidden=64, out=32.
    M, B, Din, H, Dout = 2, 8, 32, 64, 32

    key = jax.random.PRNGKey(0)
    kx, kw1, kb1, kw2, kb2 = jax.random.split(key, 5)

    x = jax.random.normal(kx, (M, B, Din), dtype=jnp.float32)
    w1 = jax.random.normal(kw1, (M, Din, H), dtype=jnp.float32) * 0.1
    b1 = jax.random.normal(kb1, (M, 1, H), dtype=jnp.float32) * 0.1
    w2 = jax.random.normal(kw2, (M, H, Dout), dtype=jnp.float32) * 0.1
    b2 = jax.random.normal(kb2, (M, 1, Dout), dtype=jnp.float32) * 0.1

    out = jax.block_until_ready(unified_model_forward(x, w1, b1, w2, b2))

    # Pure-JAX reference (same math as UnifiedModel.forward), stacked.
    ref = jnp.maximum(jnp.einsum("mbd,mdh->mbh", x, w1) + b1, 0.0)
    ref = jnp.einsum("mbh,mho->mbo", ref, w2) + b2
    assert out.shape == (M, B, Dout)
    assert jnp.allclose(out, ref, atol=1e-4, rtol=1e-4)

    # Module semantics (list of per-model outputs) — taken once, outside the
    # jitted/Pallas hot path.
    outputs = list(out)
    assert len(outputs) == M and outputs[0].shape == (B, Dout)

    print("KERNEL_OK")
</pallas_src>

<mosaic_0001>
module attributes {stable_mosaic.version = 11 : i64} {
  func.func @_mlp_kernel(%arg0: i32, %arg1: memref<1x8x32xf32, #tpu.memory_space<vmem>>, %arg2: memref<1x32x64xf32, #tpu.memory_space<vmem>>, %arg3: memref<1x1x64xf32, #tpu.memory_space<vmem>>, %arg4: memref<1x64x32xf32, #tpu.memory_space<vmem>>, %arg5: memref<1x1x32xf32, #tpu.memory_space<vmem>>, %arg6: memref<1x8x32xf32, #tpu.memory_space<vmem>>) attributes {dimension_semantics = [#tpu.dimension_semantics<parallel>], iteration_bounds = array<i64: 2>, scalar_prefetch = 0 : i64, scratch_operands = 0 : i64, tpu.core_type = #tpu.core_type<tc>, window_params = [{transform_indices = @transform_0, window_bounds = array<i64: 1, 8, 32>}, {transform_indices = @transform_1, window_bounds = array<i64: 1, 32, 64>}, {transform_indices = @transform_2, window_bounds = array<i64: 1, 1, 64>}, {transform_indices = @transform_3, window_bounds = array<i64: 1, 64, 32>}, {transform_indices = @transform_4, window_bounds = array<i64: 1, 1, 32>}, {transform_indices = @transform_5, window_bounds = array<i64: 1, 8, 32>}]} {
    %c0 = arith.constant 0 : index
    %c0_0 = arith.constant 0 : index
    %c0_1 = arith.constant 0 : index
    %0 = vector.load %arg1[%c0, %c0_0, %c0_1] : memref<1x8x32xf32, #tpu.memory_space<vmem>>, vector<1x8x32xf32>
    %1 = vector.shape_cast %0 : vector<1x8x32xf32> to vector<8x32xf32>
    %c0_2 = arith.constant 0 : index
    %c0_3 = arith.constant 0 : index
    %c0_4 = arith.constant 0 : index
    %2 = vector.load %arg2[%c0_2, %c0_3, %c0_4] : memref<1x32x64xf32, #tpu.memory_space<vmem>>, vector<1x32x64xf32>
    %3 = vector.shape_cast %2 : vector<1x32x64xf32> to vector<32x64xf32>
    %cst = arith.constant dense<0.000000e+00> : vector<8x64xf32>
    %4 = tpu.matmul %1, %3, %cst {dimension_numbers = #tpu.dot_dimension_numbers<[1], [0], [0], [1], [0, 0, 1, 1], [], []>} : vector<8x32xf32>, vector<32x64xf32>, vector<8x64xf32> -> vector<8x64xf32>
    %c0_5 = arith.constant 0 : index
    %c0_6 = arith.constant 0 : index
    %c0_7 = arith.constant 0 : index
    %5 = vector.load %arg3[%c0_5, %c0_6, %c0_7] : memref<1x1x64xf32, #tpu.memory_space<vmem>>, vector<1x1x64xf32>
    %6 = vector.shape_cast %5 : vector<1x1x64xf32> to vector<1x64xf32>
    %7 = vector.broadcast %6 : vector<1x64xf32> to vector<8x64xf32>
    %8 = arith.addf %4, %7 : vector<8x64xf32>
    %cst_8 = arith.constant 0.000000e+00 : f32
    %9 = vector.broadcast %cst_8 : f32 to vector<8x64xf32>
    %10 = arith.maximumf %8, %9 : vector<8x64xf32>
    %c0_9 = arith.constant 0 : index
    %c0_10 = arith.constant 0 : index
    %c0_11 = arith.constant 0 : index
    %11 = vector.load %arg4[%c0_9, %c0_10, %c0_11] : memref<1x64x32xf32, #tpu.memory_space<vmem>>, vector<1x64x32xf32>
    %12 = vector.shape_cast %11 : vector<1x64x32xf32> to vector<64x32xf32>
    %cst_12 = arith.constant dense<0.000000e+00> : vector<8x32xf32>
    %13 = tpu.matmul %10, %12, %cst_12 {dimension_numbers = #tpu.dot_dimension_numbers<[1], [0], [0], [1], [0, 0, 1, 1], [], []>} : vector<8x64xf32>, vector<64x32xf32>, vector<8x32xf32> -> vector<8x32xf32>
    %c0_13 = arith.constant 0 : index
    %c0_14 = arith.constant 0 : index
    %c0_15 = arith.constant 0 : index
    %14 = vector.load %arg5[%c0_13, %c0_14, %c0_15] : memref<1x1x32xf32, #tpu.memory_space<vmem>>, vector<1x1x32xf32>
    %15 = vector.shape_cast %14 : vector<1x1x32xf32> to vector<1x32xf32>
    %16 = vector.broadcast %15 : vector<1x32xf32> to vector<8x32xf32>
    %17 = arith.addf %13, %16 : vector<8x32xf32>
    %c0_16 = arith.constant 0 : index
    %c0_17 = arith.constant 0 : index
    %c0_18 = arith.constant 0 : index
    %18 = vector.load %arg6[%c0_16, %c0_17, %c0_18] : memref<1x8x32xf32, #tpu.memory_space<vmem>>, vector<1x8x32xf32>
    %19 = vector.shape_cast %18 : vector<1x8x32xf32> to vector<8x32xf32>
    %20 = vector.shape_cast %17 : vector<8x32xf32> to vector<1x8x32xf32>
    tpu.vector_store %arg6[%c0_16, %c0_17, %c0_18], %20 {strides = array<i32>} : memref<1x8x32xf32, #tpu.memory_space<vmem>>, vector<1x8x32xf32>,
    return
  }
  func.func @transform_0(%arg0: i32) -> (i32, i32, i32) {
    %c0_i32 = arith.constant 0 : i32
    %c0_i32_0 = arith.constant 0 : i32
    %c0_i32_1 = arith.constant 0 : i32
    return %arg0, %c0_i32, %c0_i32_0 : i32, i32, i32
  }
  func.func @transform_1(%arg0: i32) -> (i32, i32, i32) {
    %c0_i32 = arith.constant 0 : i32
    %c0_i32_0 = arith.constant 0 : i32
    %c0_i32_1 = arith.constant 0 : i32
    return %arg0, %c0_i32, %c0_i32_0 : i32, i32, i32
  }
  func.func @transform_2(%arg0: i32) -> (i32, i32, i32) {
    %c0_i32 = arith.constant 0 : i32
    %c0_i32_0 = arith.constant 0 : i32
    %c0_i32_1 = arith.constant 0 : i32
    return %arg0, %c0_i32, %c0_i32_0 : i32, i32, i32
  }
  func.func @transform_3(%arg0: i32) -> (i32, i32, i32) {
    %c0_i32 = arith.constant 0 : i32
    %c0_i32_0 = arith.constant 0 : i32
    %c0_i32_1 = arith.constant 0 : i32
    return %arg0, %c0_i32, %c0_i32_0 : i32, i32, i32
  }
  func.func @transform_4(%arg0: i32) -> (i32, i32, i32) {
    %c0_i32 = arith.constant 0 : i32
    %c0_i32_0 = arith.constant 0 : i32
    %c0_i32_1 = arith.constant 0 : i32
    return %arg0, %c0_i32, %c0_i32_0 : i32, i32, i32
  }
  func.func @transform_5(%arg0: i32) -> (i32, i32, i32) {
    %c0_i32 = arith.constant 0 : i32
    %c0_i32_0 = arith.constant 0 : i32
    %c0_i32_1 = arith.constant 0 : i32
    return %arg0, %c0_i32, %c0_i32_0 : i32, i32, i32
  }
}

</mosaic_0001>

<bundles_post_ra>
// kernel: unified_model_forward.1
= control target key start
LH: loop header
LB: loop body
LE: loop exit
PB: predicated region body
PF: predicated region fallthrough
CT: control target
= control target key end

     0   :  { %10 = vsyncpa [#allocation3], 0  ;;  %s923_s0 = inlined_call_operand.vmem [shape: f32[2,8,32], index: 0, kind: input, shape index: {}]   ;;  %s924_s1 = inlined_call_operand.vmem [shape: f32[2,32,64], index: 1, kind: input, shape index: {}]   ;;  %s925_s2 = inlined_call_operand.vmem [shape: f32[2,1,64], index: 2, kind: input, shape index: {}]   ;;  %s926_s3 = inlined_call_operand.vmem [shape: f32[2,64,32], index: 3, kind: input, shape index: {}]   ;;  %s927_s4 = inlined_call_operand.vmem [shape: f32[2,1,32], index: 4, kind: input, shape index: {}]   ;;  %s928_s5 = inlined_call_operand.hbm [shape: f32[2,8,32], index: 5, kind: output, shape index: {}]  }
   0x1   :  { %12 = vsyncpa [#allocation3 + $0x1], 0  ;;  %s802_s18 = smov 0   ;;  %s804_s19 = smov 0  }
   0x2   :  { %s806_s20 = smov 0   ;;  %s808_s21 = smov 0  }
   0x3 LB: > { %s823_s22 = sadd.s32 4294967295, %s766_s21   ;;  %s580_s23 = sadd.s32 4294967294, %s766_s21   ;;  %s766_s21 = sphi %s808_s21, %s934_s21   ;;  %s762_s20 = sphi %s806_s20, %s933_s20   ;;  %s758_s19 = sphi %s804_s19, %s932_s19   ;;  %s754_s18 = sphi %s802_s18, %s931_s18  }
   0x4   : > { %s827_s24 = sadd.s32 1, %s766_s21   ;;  %s155_s25 = sadd.s32 1, %s762_s20 }
   0x5   : > { %s152_s26 = ssub.s32 %s766_s21, %s827_s24  ;;  %p165_p0 = scmp.ne.s32.totalorder %s762_s20, %s758_s19 }
   0x6   : > { %p153_p1 = scmp.eq.s32.totalorder %s152_s26, 0  ;;  %p166_p2 = scmp.eq.s32.totalorder %s823_s22, 1 }
   0x7   : > { %p171_p3 = scmp.ne.s32.totalorder %s758_s19, %s754_s18  ;;  %p172_p4 = scmp.eq.s32.totalorder %s580_s23, 1 }
   0x8   : > { %s838_s27 = scalar_select %p153_p1, %s762_s20, %s155_s25  }
   0x9   : > { %p840_p5 = por %p166_p2, %p165_p0  ;;  %p844_p6 = por %p172_p4, %p171_p3 }
   0xa   : > { %p583_p7 = scmp.ge.s32.totalorder %s766_s21, 1  ;;  %p225_p8 = scmp.lt.s32.totalorder %s766_s21, 3 }
   0xc   : > { %p226_p9 = pnand %p583_p7, %p225_p8 }
   0xd   : > { %p268_p10 = scmp.lt.s32.totalorder (!%p226_p9), %s823_s22, 1  ;;  %v768_v0 = vmov (!%p226_p9), 0.0|0.0   ;;  %vm769_vm0 = vmmov (!%p226_p9), 0   ;;  %v770_v1 = vmov (!%p226_p9), 0.0   ;;  %vm300_vm1 = vcmask (!%p226_p9), 261120  }
   0xe   : > { %229 = sbr.rel (%p226_p9) target bundleno = 479 (0x1df), region = 40  ;;  %644 = vmatprep.subr.bf16.mxu0 (!%p226_p9), %v768_v0  ;;  %622 = vmatprep.mubr.msk.f32.mxu0 (!%p226_p9), %vm769_vm0, %v770_v1  ;;  %vm390_vm2 = vcmask (!%p226_p9), 523264  }
   0xf   : > { %650 = vmatprep.subr.bf16.mxu1 (!%p226_p9), %v768_v0  ;;  %641 = vmatprep.mubr.msk.f32.mxu1 (!%p226_p9), %vm769_vm0, %v770_v1 }
  0x15   : > { %s852_s30 = scalar_select %p268_p10, %s823_s22, 1 }
  0x17   : > { %s598_s6 = sshll.u32 %s852_s30, 5  ;;  %s599_s10 = sshll.u32 %s852_s30, 6 }
  0x18   : > { %s276_s9 = scalar_lea.vmem %s924_s1, %s598_s6  ;;  %s585_s11 = sshll.u32 %s852_s30, 3 }
  0x19   : > { %v289_v2 = vld [vmem:[%s276_s9] sm:$0xff]  ;;  %v290_v3 = vld [vmem:[%s276_s9 + $0x8] sm:$0xff]  ;;  %v291_v4 = vld [vmem:[%s276_s9 + $0x10] sm:$0xff]  ;;  %s284_s14 = scalar_lea.vmem %s926_s3, %s599_s10  ;;  %s271_s17 = scalar_lea.vmem %s923_s0, %s585_s11 }
  0x1a   : > { %v645_v5 = vpack.c.bf16 %v290_v3, %v289_v2  ;;  %v292_v6 = vld [vmem:[%s276_s9 + $0x18] sm:$0xff]  ;;  %v375_v7 = vld [vmem:[%s284_s14] sm:$0xff]  ;;  %v376_v8 = vld [vmem:[%s284_s14 + $0x8] sm:$0xff]  ;;  %s279_s26 = scalar_lea.vmem %s925_s2, %s852_s30  ;;  %s265_s6 = sand.u32 1, %s758_s19  }
  0x1b   : > { %v377_v9 = vld [vmem:[%s284_s14 + $0x10] sm:$0xff]  ;;  %v648_v10 = vpack.c.bf16 %v292_v6, %v291_v4  ;;  %v651_v11 = vpack.c.bf16 %v376_v8, %v375_v7  ;;  %v378_v12 = vld [vmem:[%s284_s14 + $0x18] sm:$0xff]  ;;  %v379_v14 = vld [vmem:[%s284_s14 + $0x20] sm:$0xff]  ;;  %s584_s7 = sshll.u32 %s265_s6, 3  ;;  %s287_s10 = scalar_lea.vmem %s927_s4, %s852_s30 }
  0x1c   : > { %646 = vmatpush3.bf16.msra.mxu0 %v645_v5  ;;  %v654_v13 = vpack.c.bf16 %v378_v12, %v377_v9  ;;  %v380_v15 = vld [vmem:[%s284_s14 + $0x28] sm:$0xff]  ;;  %v288_v16 = vld [vmem:[%s271_s17] sm:$0xff]  ;;  %v381_v18 = vld [vmem:[%s284_s14 + $0x30] sm:$0xff]  ;;  %s595_s11 = sshll.u32 %s823_s22, 7  ;;  %s267_s12 = scalar_lea.vmem [#allocation2], %s584_s7 }
  0x1d   : > { %647 = vmatprep.subr.bf16.mxu0 %v768_v0  ;;  %652 = vmatpush3.bf16.msra.mxu1 %v651_v11  ;;  %v657_v17 = vpack.c.bf16 %v380_v15, %v379_v14  ;;  %v382_v19 = vld [vmem:[%s284_s14 + $0x38] sm:$0xff]  ;;  %v590_v21 = vld [vmem:[%s279_s26] ss:$0 sm:$0xff]  ;;  %s479_s13 = sshll.u32 %s267_s12, 4  ;;  %s880_s16 = scalar_lea.hbm %s928_s5, %s595_s11  ;;  %s882_s13 = int_to_ptr.vmem [resolvable:$true] %s479_s13 }
  0x1e   : > { %653 = vmatprep.subr.bf16.mxu1 %v768_v0  ;;  %v660_v20 = vpack.c.bf16 %v382_v19, %v381_v18  ;;  %v592_v26 = vld [vmem:[%s287_s10] ss:$0 sm:$0xff]  ;;  %s466_s30 = scalar_lea.sflag [#allocation3], %s265_s6  ;;  %s704_s17 = scalar_lea.vmem %s882_s13, 128 }
  0x1f   : > { %p705_p11 = scmp.ne.s32.totalorder %s882_s13, %s704_s17  ;;  %s771_s22 = smov [#allocation2]  }
  0x20   : > { %649 = vmatpush3.bf16.msra.mxu0 %v648_v10  ;;  %s708_s23 = sshll.u32 %s771_s22, 4  ;;  %s709_s23 = int_to_ptr.vmem [resolvable:$false] %s708_s23 }
  0x21   : > { %655 = vmatpush3.bf16.msra.mxu1 %v654_v13  ;;  %p706_p12 = pnand %p705_p11, %p840_p5  ;;  %s710_s25 = scalar_lea.vmem %s709_s23, 256 }
  0x22   : > { %656 = vmatprep.subr.bf16.mxu1 %v768_v0  ;;  %p711_p0 = scmp.lt.s32.totalorder %s882_s13, %s709_s23  ;;  %p712_p1 = scmp.lt.s32.totalorder %s710_s25, %s704_s17 }
  0x23   : > { %623 = vmatmul.mubr.msk.f32.vlgmr.msra.gmra.mrb[0].mxu0 %vm300_vm1, %v288_v16  ;;  %p707_p13 = pneg %p706_p12 }
  0x24   : > { %p713_p2 = por %p712_p1, %p711_p0 }
  0x25   : > { %658 = vmatpush3.bf16.msra.mxu1 %v657_v17 }
  0x26   : > { %659 = vmatprep.subr.bf16.mxu1 %v768_v0  ;;  %p714_p3 = pnand %p713_p2, %p707_p13 }
  0x29   : > { %661 = vmatpush3.bf16.msra.mxu1 %v660_v20 }
  0xf6   : > { %v370_v22 = vpop.f32.mrb[0].mxu0 }
  0xf7   : > { %v371_v23 = vadd.f32 %v590_v21, %v370_v22  ;;  %v624_v24 = vpop.f32.mrb[1].mxu0 }
  0xf9   : > { %v374_v25 = vmax.f32 %v371_v23, 0.0 }
  0xfb   : > { %642 = vmatmul.mubr.msk.f32.vlgmr.msra.gmra.mrb[0].mxu1 %vm390_vm2, %v374_v25 }
 0x1ce   : > { %v460_v27 = vpop.f32.mrb[0].mxu1 }
 0x1cf   : > { %v461_v28 = vadd.f32 %v592_v26, %v460_v27  ;;  %v643_v29 = vpop.f32.mrb[1].mxu1 }
 0x1d1   : > { %464 = vst.msk [vmem:[%s267_s12] sm:$0xff] %vm300_vm1, %v461_v28 }
 0x1d2   : > { %717 = shalt.err (!%p714_p3)
}
 0x1d3   : > { %s718_s26 = scalar_lea.hbm %s880_s16, 128  ;;  %s722_s8 = scalar_lea.hbm %s928_s5, 256 }
 0x1d4   : > { %p719_p4 = scmp.ne.s32.totalorder %s880_s16, %s718_s26  ;;  %p723_p9 = scmp.lt.u32.totalorder %s880_s16, %s928_s5 }
 0x1d5   : > { %p724_p10 = scmp.lt.u32.totalorder %s722_s8, %s718_s26  ;;  %p726_p12 = scmp.lt.u32.totalorder %s718_s26, %s880_s16 }
 0x1d6   : > { %p720_p7 = pnand %p719_p4, %p840_p5 }
 0x1d7   : > { %p725_p11 = por %p724_p10, %p723_p9 }
 0x1d8   : > { %p721_p8 = pneg %p720_p7 }
 0x1d9   : > { %p727_p13 = por %p726_p12, %p725_p11 }
 0x1db   : > { %p728_p0 = pnand %p727_p13, %p721_p8 }
 0x1dd   : > { %731 = shalt.err (!%p728_p0)
}
 0x1de   : > { %662 = dma.vmem_to_hbm [thread:$0]  (%p840_p5), %s882_s13, 128, %s880_s16, %s466_s30  }
 0x1df PF: > { %p668_p1 = scmp.ge.s32.totalorder %s766_s21, 2  ;;  %s491_s11 = sand.u32 1, %s754_s18  }
 0x1e0   : > { %s492_s12 = scalar_lea.sflag [#allocation3], %s491_s11 }
 0x1e1   : > { %p665_p2 = pnand %p668_p1, %p844_p6 }
 0x1e3   : > { %749 = dma.done.wait (!%p665_p2), %s492_s12, 128  }
 0x1e4   : > { %751 = vsyncadd (!%p665_p2), %s492_s12, 4294967168  ;;  %p15_p3 = scmp.ge.s32.totalorder %s827_s24, 4   ;;  %s931_s18 = smov %s758_s19 }
 0x1e5   : > { %s932_s19 = smov %s762_s20  ;;  %s933_s20 = smov %s838_s27 }
 0x1e6   : > { %s934_s21 = smov %s827_s24  ;;  %17 = sbr.rel (!%p15_p3) target bundleno = 3 (0x3), region = 87 }
 0x1ed   :  { %497 = vsyncpa [#allocation3], 1 }
 0x1ee   :  { %499 = vsyncpa [#allocation3 + $0x1], 1 }

</bundles_post_ra>
